<compile_context>
chip_gen: v7x
topology: tpu7x:2x2x1
jax: 0.10.0
libtpu: 0.0.40
codegen_flags: <defaults>
</compile_context>

<pallas_src>
import functools
import math

import jax
import jax.numpy as jnp
from jax import lax
from jax.experimental import pallas as pl
from jax.experimental.pallas import tpu as pltpu


# ---------------------------------------------------------------------------
# Fused kernel: one grid step == Bb batch elements, all intermediates in VMEM.
# ---------------------------------------------------------------------------
def fused_cross_attention_kernel(xq_ref, xc_ref,
                                 wq_ref, bq_ref,
                                 wk_ref, bk_ref,
                                 wv_ref, bv_ref,
                                 wo_ref, bo_ref,
                                 o_ref,
                                 *, bb, heads, head_dim, value_dim):
    _, Lq, Dq = xq_ref.shape
    _, Lk, Dc = xc_ref.shape
    out_pad = o_ref.shape[2]

    # Collapse the batch block into the MXU M-dimension (bf16 inputs).
    xq = xq_ref[...].reshape(bb * Lq, Dq).astype(jnp.bfloat16)
    xc = xc_ref[...].reshape(bb * Lk, Dc).astype(jnp.bfloat16)

    # --- projections (MXU, bf16 in / f32 accumulate) -------------------------
    # 1/sqrt(head_dim) is already folded into wq/bq (prepare_params).
    q = (jnp.dot(xq, wq_ref[...], preferred_element_type=jnp.float32)
         + bq_ref[...])                                          # [Bb*Lq, H*Dh] f32
    k = (jnp.dot(xc, wk_ref[...], preferred_element_type=jnp.float32)
         + bk_ref[...])                                          # [Bb*Lk, H*Dh] f32
    v = (jnp.dot(xc, wv_ref[...], preferred_element_type=jnp.float32)
         + bv_ref[...])                                          # [Bb*Lk, H*Dv] f32

    # bf16 copies feed the MXU for the attention matmuls.
    q_bf = q.astype(jnp.bfloat16)
    k_bf = k.astype(jnp.bfloat16)
    v_bf = v.astype(jnp.bfloat16)
    wo = wo_ref[...]                                             # [H*Dv, out_pad] bf16
    bo = bo_ref[...]                                             # [1, out_pad]    f32

    # --- attention + fused output projection (static unroll over b, h) -------
    for b in range(bb):
        qb = q_bf[b * Lq:(b + 1) * Lq]                           # [Lq, H*Dh]
        kb = k_bf[b * Lk:(b + 1) * Lk]                           # [Lk, H*Dh]
        vb = v_bf[b * Lk:(b + 1) * Lk]                           # [Lk, H*Dv]

        acc = jnp.zeros((Lq, out_pad), jnp.float32)
        for h in range(heads):
            qh = qb[:, h * head_dim:(h + 1) * head_dim]          # [Lq, Dh]
            kh = kb[:, h * head_dim:(h + 1) * head_dim]          # [Lk, Dh]
            vh = vb[:, h * value_dim:(h + 1) * value_dim]        # [Lk, Dv]
            woh = wo[h * value_dim:(h + 1) * value_dim, :]       # [Dv, out_pad]

            # QK^T contracting Dh directly (no explicit transpose of k).
            s = lax.dot_general(qh, kh, (((1,), (1,)), ((), ())),
                                preferred_element_type=jnp.float32)   # [Lq, Lk] f32
            m = jnp.max(s, axis=-1, keepdims=True)
            e = jnp.exp(s - m)                                   # f32 (v5e-safe)
            denom = jnp.sum(e, axis=-1, keepdims=True)
            p = (e * pl.reciprocal(denom, approx=True)).astype(jnp.bfloat16)

            oh = jnp.dot(p, vh, preferred_element_type=jnp.float32)   # [Lq, Dv]
            # Fold the output projection of this head straight into the
            # accumulator -> no [Lq, H*Dv] intermediate, no concatenate.
            acc = acc + jnp.dot(oh.astype(jnp.bfloat16), woh,
                                preferred_element_type=jnp.float32)

        # Lane-dense [Lq, out_pad] store (out_pad is a multiple of 128).
        o_ref[b] = (acc + bo).astype(o_ref.dtype)


# ---------------------------------------------------------------------------
# One-time parameter preparation (NOT per forward call):
#   * fold 1/sqrt(head_dim) into wq/bq
#   * cast weights to bf16 (biases stay f32)
#   * zero-pad wo/bo so the output lane width is a multiple of 128
# ---------------------------------------------------------------------------
def prepare_params(params, heads, head_dim):
    scale_inv = 1.0 / math.sqrt(head_dim)
    out_dim = params["wo"].shape[1]
    out_pad = max(128, ((out_dim + 127) // 128) * 128)
    pad = out_pad - out_dim

    wo_p = jnp.pad(params["wo"], ((0, 0), (0, pad)))
    bo_p = jnp.pad(params["bo"], ((0, pad),))

    return dict(
        wq=(params["wq"] * scale_inv).astype(jnp.bfloat16),
        bq=(params["bq"] * scale_inv).reshape(1, -1).astype(jnp.float32),
        wk=params["wk"].astype(jnp.bfloat16),
        bk=params["bk"].reshape(1, -1).astype(jnp.float32),
        wv=params["wv"].astype(jnp.bfloat16),
        bv=params["bv"].reshape(1, -1).astype(jnp.float32),
        wo=wo_p.astype(jnp.bfloat16),
        bo=bo_p.reshape(1, -1).astype(jnp.float32),
        out_dim=out_dim,
        out_pad=out_pad,
    )


def _pick_batch_block(batch, cap=8):
    for bb in range(min(batch, cap), 0, -1):
        if batch % bb == 0:
            return bb
    return 1


# ---------------------------------------------------------------------------
# Wrapper: one pallas_call for the entire forward pass.
# ---------------------------------------------------------------------------
def cross_attention_forward(prepared, query_input, context_input,
                            heads, head_dim, value_dim):
    B, Lq, Dq = query_input.shape
    _, Lk, Dc = context_input.shape
    hdh = heads * head_dim
    hdv = heads * value_dim
    out_dim = prepared["out_dim"]
    out_pad = prepared["out_pad"]

    bb = _pick_batch_block(B)
    grid = (B // bb,)

    kernel = functools.partial(
        fused_cross_attention_kernel,
        bb=bb, heads=heads, head_dim=head_dim, value_dim=value_dim)

    out_padded = pl.pallas_call(
        kernel,
        out_shape=jax.ShapeDtypeStruct((B, Lq, out_pad), query_input.dtype),
        grid=grid,
        in_specs=[
            pl.BlockSpec((bb, Lq, Dq), lambda g: (g, 0, 0)),     # query block
            pl.BlockSpec((bb, Lk, Dc), lambda g: (g, 0, 0)),     # context block
            pl.BlockSpec((Dq, hdh), lambda g: (0, 0)),           # wq (scaled, bf16)
            pl.BlockSpec((1, hdh), lambda g: (0, 0)),            # bq (scaled, f32)
            pl.BlockSpec((Dc, hdh), lambda g: (0, 0)),           # wk
            pl.BlockSpec((1, hdh), lambda g: (0, 0)),            # bk
            pl.BlockSpec((Dc, hdv), lambda g: (0, 0)),           # wv
            pl.BlockSpec((1, hdv), lambda g: (0, 0)),            # bv
            pl.BlockSpec((hdv, out_pad), lambda g: (0, 0)),      # wo (padded)
            pl.BlockSpec((1, out_pad), lambda g: (0, 0)),        # bo (padded)
        ],
        out_specs=pl.BlockSpec((bb, Lq, out_pad), lambda g: (g, 0, 0)),
        compiler_params=pltpu.CompilerParams(
            dimension_semantics=("parallel",)),                  # megacore-able
    )(query_input, context_input,
      prepared["wq"], prepared["bq"],
      prepared["wk"], prepared["bk"],
      prepared["wv"], prepared["bv"],
      prepared["wo"], prepared["bo"])

    # Strip the lane padding outside the kernel.
    return out_padded[..., :out_dim]


# ---------------------------------------------------------------------------
# Parameter init (weights stored [in, out]; math identical to torch Linear).
# ---------------------------------------------------------------------------
def init_params(key, query_dim, context_dim, heads, head_dim, value_dim, out_dim):
    ks = jax.random.split(key, 8)

    def lin(kw, kb, din, dout):
        bound = 1.0 / math.sqrt(din)
        w = jax.random.uniform(kw, (din, dout), jnp.float32, -bound, bound)
        b = jax.random.uniform(kb, (dout,), jnp.float32, -bound, bound)
        return w, b

    wq, bq = lin(ks[0], ks[1], query_dim, heads * head_dim)
    wk, bk = lin(ks[2], ks[3], context_dim, heads * head_dim)
    wv, bv = lin(ks[4], ks[5], context_dim, heads * value_dim)
    wo, bo = lin(ks[6], ks[7], heads * value_dim, out_dim)
    return dict(wq=wq, bq=bq, wk=wk, bk=bk, wv=wv, bv=bv, wo=wo, bo=bo)


# ---------------------------------------------------------------------------
# Pure-JAX f32 reference (for correctness check)
# ---------------------------------------------------------------------------
def reference_forward(params, query_input, context_input, heads, head_dim, value_dim):
    B, Lq, _ = query_input.shape
    _, Lk, _ = context_input.shape
    scale = math.sqrt(head_dim)
    q = (query_input @ params["wq"] + params["bq"]).reshape(
        B, Lq, heads, head_dim).transpose(0, 2, 1, 3)
    k = (context_input @ params["wk"] + params["bk"]).reshape(
        B, Lk, heads, head_dim).transpose(0, 2, 1, 3)
    v = (context_input @ params["wv"] + params["bv"]).reshape(
        B, Lk, heads, value_dim).transpose(0, 2, 1, 3)
    s = jnp.einsum("bhqd,bhkd->bhqk", q, k) / scale
    p = jax.nn.softmax(s, axis=-1)
    o = jnp.einsum("bhqk,bhkd->bhqd", p, v)
    o = o.transpose(0, 2, 1, 3).reshape(B, Lq, heads * value_dim)
    return o @ params["wo"] + params["bo"]


if __name__ == "__main__":
    # Small shapes consistent with the module's forward()
    B, Lq, Lk = 2, 8, 16
    query_dim, context_dim = 32, 24
    heads, head_dim = 2, 16
    value_dim = head_dim                      # module default (value_dim=None)
    out_dim = heads * value_dim               # module default (out_dim=None)

    key = jax.random.PRNGKey(0)
    kp, kq, kc = jax.random.split(key, 3)
    params = init_params(kp, query_dim, context_dim, heads, head_dim,
                         value_dim, out_dim)
    prepared = prepare_params(params, heads, head_dim)   # one-time weight prep

    query_input = jax.random.normal(kq, (B, Lq, query_dim), jnp.float32)
    context_input = jax.random.normal(kc, (B, Lk, context_dim), jnp.float32)

    out = cross_attention_forward(prepared, query_input, context_input,
                                  heads, head_dim, value_dim)
    out = jax.block_until_ready(out)

    ref = reference_forward(params, query_input, context_input,
                            heads, head_dim, value_dim)
    assert out.shape == (B, Lq, out_dim), out.shape
    # Tolerance accounts for bf16 MXU inputs (f32 accumulation) and the
    # approximate EUP reciprocal in the softmax denominator.
    assert jnp.allclose(out, ref, atol=3e-2, rtol=3e-2), "mismatch vs reference"

    print("KERNEL_OK")
</pallas_src>

<mosaic_0001>
module attributes {stable_mosaic.version = 11 : i64} {
  func.func @fused_cross_attention_kernel(%arg0: i32, %arg1: memref<2x8x32xf32, #tpu.memory_space<vmem>>, %arg2: memref<2x16x24xf32, #tpu.memory_space<vmem>>, %arg3: memref<32x32xbf16, #tpu.memory_space<vmem>>, %arg4: memref<1x32xf32, #tpu.memory_space<vmem>>, %arg5: memref<24x32xbf16, #tpu.memory_space<vmem>>, %arg6: memref<1x32xf32, #tpu.memory_space<vmem>>, %arg7: memref<24x32xbf16, #tpu.memory_space<vmem>>, %arg8: memref<1x32xf32, #tpu.memory_space<vmem>>, %arg9: memref<32x128xbf16, #tpu.memory_space<vmem>>, %arg10: memref<1x128xf32, #tpu.memory_space<vmem>>, %arg11: memref<2x8x128xf32, #tpu.memory_space<vmem>>) attributes {dimension_semantics = [#tpu.dimension_semantics<parallel>], iteration_bounds = array<i64: 1>, scalar_prefetch = 0 : i64, scratch_operands = 0 : i64, tpu.core_type = #tpu.core_type<tc>, window_params = [{transform_indices = @transform_0, window_bounds = array<i64: 2, 8, 32>}, {transform_indices = @transform_1, window_bounds = array<i64: 2, 16, 24>}, {pipeline_mode = #tpu.pipeline_mode<synchronous>, transform_indices = @transform_2, window_bounds = array<i64: 32, 32>}, {pipeline_mode = #tpu.pipeline_mode<synchronous>, transform_indices = @transform_3, window_bounds = array<i64: 1, 32>}, {pipeline_mode = #tpu.pipeline_mode<synchronous>, transform_indices = @transform_4, window_bounds = array<i64: 24, 32>}, {pipeline_mode = #tpu.pipeline_mode<synchronous>, transform_indices = @transform_5, window_bounds = array<i64: 1, 32>}, {pipeline_mode = #tpu.pipeline_mode<synchronous>, transform_indices = @transform_6, window_bounds = array<i64: 24, 32>}, {pipeline_mode = #tpu.pipeline_mode<synchronous>, transform_indices = @transform_7, window_bounds = array<i64: 1, 32>}, {pipeline_mode = #tpu.pipeline_mode<synchronous>, transform_indices = @transform_8, window_bounds = array<i64: 32, 128>}, {pipeline_mode = #tpu.pipeline_mode<synchronous>, transform_indices = @transform_9, window_bounds = array<i64: 1, 128>}, {transform_indices = @transform_10, window_bounds = array<i64: 2, 8, 128>}]} {
    %c0 = arith.constant 0 : index
    %c0_0 = arith.constant 0 : index
    %c0_1 = arith.constant 0 : index
    %0 = vector.load %arg1[%c0, %c0_0, %c0_1] : memref<2x8x32xf32, #tpu.memory_space<vmem>>, vector<2x8x32xf32>
    %1 = vector.shape_cast %0 : vector<2x8x32xf32> to vector<16x32xf32>
    %2 = arith.truncf %1 : vector<16x32xf32> to vector<16x32xbf16>
    %c0_2 = arith.constant 0 : index
    %c0_3 = arith.constant 0 : index
    %c0_4 = arith.constant 0 : index
    %3 = vector.load %arg2[%c0_2, %c0_3, %c0_4] : memref<2x16x24xf32, #tpu.memory_space<vmem>>, vector<2x16x24xf32>
    %4 = vector.shape_cast %3 : vector<2x16x24xf32> to vector<32x24xf32>
    %5 = arith.truncf %4 : vector<32x24xf32> to vector<32x24xbf16>
    %c0_5 = arith.constant 0 : index
    %c0_6 = arith.constant 0 : index
    %6 = vector.load %arg3[%c0_5, %c0_6] : memref<32x32xbf16, #tpu.memory_space<vmem>>, vector<32x32xbf16>
    %cst = arith.constant dense<0.000000e+00> : vector<16x32xf32>
    %7 = tpu.matmul %2, %6, %cst {dimension_numbers = #tpu.dot_dimension_numbers<[1], [0], [0], [1], [0, 0, 1, 1], [], []>} : vector<16x32xbf16>, vector<32x32xbf16>, vector<16x32xf32> -> vector<16x32xf32>
    %c0_7 = arith.constant 0 : index
    %c0_8 = arith.constant 0 : index
    %8 = vector.load %arg4[%c0_7, %c0_8] : memref<1x32xf32, #tpu.memory_space<vmem>>, vector<1x32xf32>
    %9 = vector.broadcast %8 : vector<1x32xf32> to vector<16x32xf32>
    %10 = arith.addf %7, %9 : vector<16x32xf32>
    %c0_9 = arith.constant 0 : index
    %c0_10 = arith.constant 0 : index
    %11 = vector.load %arg5[%c0_9, %c0_10] : memref<24x32xbf16, #tpu.memory_space<vmem>>, vector<24x32xbf16>
    %cst_11 = arith.constant dense<0.000000e+00> : vector<32x32xf32>
    %12 = tpu.matmul %5, %11, %cst_11 {dimension_numbers = #tpu.dot_dimension_numbers<[1], [0], [0], [1], [0, 0, 1, 1], [], []>} : vector<32x24xbf16>, vector<24x32xbf16>, vector<32x32xf32> -> vector<32x32xf32>
    %c0_12 = arith.constant 0 : index
    %c0_13 = arith.constant 0 : index
    %13 = vector.load %arg6[%c0_12, %c0_13] : memref<1x32xf32, #tpu.memory_space<vmem>>, vector<1x32xf32>
    %14 = vector.broadcast %13 : vector<1x32xf32> to vector<32x32xf32>
    %15 = arith.addf %12, %14 : vector<32x32xf32>
    %c0_14 = arith.constant 0 : index
    %c0_15 = arith.constant 0 : index
    %16 = vector.load %arg7[%c0_14, %c0_15] : memref<24x32xbf16, #tpu.memory_space<vmem>>, vector<24x32xbf16>
    %cst_16 = arith.constant dense<0.000000e+00> : vector<32x32xf32>
    %17 = tpu.matmul %5, %16, %cst_16 {dimension_numbers = #tpu.dot_dimension_numbers<[1], [0], [0], [1], [0, 0, 1, 1], [], []>} : vector<32x24xbf16>, vector<24x32xbf16>, vector<32x32xf32> -> vector<32x32xf32>
    %c0_17 = arith.constant 0 : index
    %c0_18 = arith.constant 0 : index
    %18 = vector.load %arg8[%c0_17, %c0_18] : memref<1x32xf32, #tpu.memory_space<vmem>>, vector<1x32xf32>
    %19 = vector.broadcast %18 : vector<1x32xf32> to vector<32x32xf32>
    %20 = arith.addf %17, %19 : vector<32x32xf32>
    %21 = arith.truncf %10 : vector<16x32xf32> to vector<16x32xbf16>
    %22 = arith.truncf %15 : vector<32x32xf32> to vector<32x32xbf16>
    %23 = arith.truncf %20 : vector<32x32xf32> to vector<32x32xbf16>
    %c0_19 = arith.constant 0 : index
    %c0_20 = arith.constant 0 : index
    %24 = vector.load %arg9[%c0_19, %c0_20] : memref<32x128xbf16, #tpu.memory_space<vmem>>, vector<32x128xbf16>
    %c0_21 = arith.constant 0 : index
    %c0_22 = arith.constant 0 : index
    %25 = vector.load %arg10[%c0_21, %c0_22] : memref<1x128xf32, #tpu.memory_space<vmem>>, vector<1x128xf32>
    %26 = vector.extract_strided_slice %21 {offsets = [0, 0], sizes = [8, 32], strides = [1, 1]} : vector<16x32xbf16> to vector<8x32xbf16>
    %27 = vector.extract_strided_slice %22 {offsets = [0, 0], sizes = [16, 32], strides = [1, 1]} : vector<32x32xbf16> to vector<16x32xbf16>
    %28 = vector.extract_strided_slice %23 {offsets = [0, 0], sizes = [16, 32], strides = [1, 1]} : vector<32x32xbf16> to vector<16x32xbf16>
    %cst_23 = arith.constant 0.000000e+00 : f32
    %29 = vector.broadcast %cst_23 : f32 to vector<8x128xf32>
    %30 = vector.extract_strided_slice %26 {offsets = [0, 0], sizes = [8, 16], strides = [1, 1]} : vector<8x32xbf16> to vector<8x16xbf16>
    %31 = vector.extract_strided_slice %27 {offsets = [0, 0], sizes = [16, 16], strides = [1, 1]} : vector<16x32xbf16> to vector<16x16xbf16>
    %32 = vector.extract_strided_slice %28 {offsets = [0, 0], sizes = [16, 16], strides = [1, 1]} : vector<16x32xbf16> to vector<16x16xbf16>
    %33 = vector.extract_strided_slice %24 {offsets = [0, 0], sizes = [16, 128], strides = [1, 1]} : vector<32x128xbf16> to vector<16x128xbf16>
    %cst_24 = arith.constant dense<0.000000e+00> : vector<8x16xf32>
    %34 = tpu.matmul %30, %31, %cst_24 {dimension_numbers = #tpu.dot_dimension_numbers<[1], [1], [0], [0], [0, 0, 1, 0], [], []>} : vector<8x16xbf16>, vector<16x16xbf16>, vector<8x16xf32> -> vector<8x16xf32>
    %cst_25 = arith.constant dense<0xFF800000> : vector<8xf32>
    %35 = vector.multi_reduction <maximumf>, %34, %cst_25 [1] : vector<8x16xf32> to vector<8xf32>
    %36 = vector.shape_cast %35 : vector<8xf32> to vector<8x1xf32>
    %37 = vector.broadcast %36 : vector<8x1xf32> to vector<8x16xf32>
    %38 = arith.subf %34, %37 : vector<8x16xf32>
    %39 = math.exp %38 : vector<8x16xf32>
    %cst_26 = arith.constant dense<0.000000e+00> : vector<8xf32>
    %40 = vector.multi_reduction <add>, %39, %cst_26 [1] : vector<8x16xf32> to vector<8xf32>
    %41 = vector.shape_cast %40 : vector<8xf32> to vector<8x1xf32>
    %42 = tpu.reciprocal %41 {approx = true} : vector<8x1xf32> -> vector<8x1xf32>
    %43 = vector.broadcast %42 : vector<8x1xf32> to vector<8x16xf32>
    %44 = arith.mulf %39, %43 : vector<8x16xf32>
    %45 = arith.truncf %44 : vector<8x16xf32> to vector<8x16xbf16>
    %cst_27 = arith.constant dense<0.000000e+00> : vector<8x16xf32>
    %46 = tpu.matmul %45, %32, %cst_27 {dimension_numbers = #tpu.dot_dimension_numbers<[1], [0], [0], [1], [0, 0, 1, 1], [], []>} : vector<8x16xbf16>, vector<16x16xbf16>, vector<8x16xf32> -> vector<8x16xf32>
    %47 = arith.truncf %46 : vector<8x16xf32> to vector<8x16xbf16>
    %cst_28 = arith.constant dense<0.000000e+00> : vector<8x128xf32>
    %48 = tpu.matmul %47, %33, %cst_28 {dimension_numbers = #tpu.dot_dimension_numbers<[1], [0], [0], [1], [0, 0, 1, 1], [], []>} : vector<8x16xbf16>, vector<16x128xbf16>, vector<8x128xf32> -> vector<8x128xf32>
    %49 = arith.addf %29, %48 : vector<8x128xf32>
    %50 = vector.extract_strided_slice %26 {offsets = [0, 16], sizes = [8, 16], strides = [1, 1]} : vector<8x32xbf16> to vector<8x16xbf16>
    %51 = vector.extract_strided_slice %27 {offsets = [0, 16], sizes = [16, 16], strides = [1, 1]} : vector<16x32xbf16> to vector<16x16xbf16>
    %52 = vector.extract_strided_slice %28 {offsets = [0, 16], sizes = [16, 16], strides = [1, 1]} : vector<16x32xbf16> to vector<16x16xbf16>
    %53 = vector.extract_strided_slice %24 {offsets = [16, 0], sizes = [16, 128], strides = [1, 1]} : vector<32x128xbf16> to vector<16x128xbf16>
    %cst_29 = arith.constant dense<0.000000e+00> : vector<8x16xf32>
    %54 = tpu.matmul %50, %51, %cst_29 {dimension_numbers = #tpu.dot_dimension_numbers<[1], [1], [0], [0], [0, 0, 1, 0], [], []>} : vector<8x16xbf16>, vector<16x16xbf16>, vector<8x16xf32> -> vector<8x16xf32>
    %cst_30 = arith.constant dense<0xFF800000> : vector<8xf32>
    %55 = vector.multi_reduction <maximumf>, %54, %cst_30 [1] : vector<8x16xf32> to vector<8xf32>
    %56 = vector.shape_cast %55 : vector<8xf32> to vector<8x1xf32>
    %57 = vector.broadcast %56 : vector<8x1xf32> to vector<8x16xf32>
    %58 = arith.subf %54, %57 : vector<8x16xf32>
    %59 = math.exp %58 : vector<8x16xf32>
    %cst_31 = arith.constant dense<0.000000e+00> : vector<8xf32>
    %60 = vector.multi_reduction <add>, %59, %cst_31 [1] : vector<8x16xf32> to vector<8xf32>
    %61 = vector.shape_cast %60 : vector<8xf32> to vector<8x1xf32>
    %62 = tpu.reciprocal %61 {approx = true} : vector<8x1xf32> -> vector<8x1xf32>
    %63 = vector.broadcast %62 : vector<8x1xf32> to vector<8x16xf32>
    %64 = arith.mulf %59, %63 : vector<8x16xf32>
    %65 = arith.truncf %64 : vector<8x16xf32> to vector<8x16xbf16>
    %cst_32 = arith.constant dense<0.000000e+00> : vector<8x16xf32>
    %66 = tpu.matmul %65, %52, %cst_32 {dimension_numbers = #tpu.dot_dimension_numbers<[1], [0], [0], [1], [0, 0, 1, 1], [], []>} : vector<8x16xbf16>, vector<16x16xbf16>, vector<8x16xf32> -> vector<8x16xf32>
    %67 = arith.truncf %66 : vector<8x16xf32> to vector<8x16xbf16>
    %cst_33 = arith.constant dense<0.000000e+00> : vector<8x128xf32>
    %68 = tpu.matmul %67, %53, %cst_33 {dimension_numbers = #tpu.dot_dimension_numbers<[1], [0], [0], [1], [0, 0, 1, 1], [], []>} : vector<8x16xbf16>, vector<16x128xbf16>, vector<8x128xf32> -> vector<8x128xf32>
    %69 = arith.addf %49, %68 : vector<8x128xf32>
    %70 = vector.broadcast %25 : vector<1x128xf32> to vector<8x128xf32>
    %71 = arith.addf %69, %70 : vector<8x128xf32>
    %c0_34 = arith.constant 0 : index
    %c0_35 = arith.constant 0 : index
    %c0_36 = arith.constant 0 : index
    %72 = vector.load %arg11[%c0_34, %c0_35, %c0_36] : memref<2x8x128xf32, #tpu.memory_space<vmem>>, vector<1x8x128xf32>
    %73 = vector.shape_cast %72 : vector<1x8x128xf32> to vector<8x128xf32>
    %74 = vector.shape_cast %71 : vector<8x128xf32> to vector<1x8x128xf32>
    tpu.vector_store %arg11[%c0_34, %c0_35, %c0_36], %74 {strides = array<i32>} : memref<2x8x128xf32, #tpu.memory_space<vmem>>, vector<1x8x128xf32>,
    %75 = vector.extract_strided_slice %21 {offsets = [8, 0], sizes = [8, 32], strides = [1, 1]} : vector<16x32xbf16> to vector<8x32xbf16>
    %76 = vector.extract_strided_slice %22 {offsets = [16, 0], sizes = [16, 32], strides = [1, 1]} : vector<32x32xbf16> to vector<16x32xbf16>
    %77 = vector.extract_strided_slice %23 {offsets = [16, 0], sizes = [16, 32], strides = [1, 1]} : vector<32x32xbf16> to vector<16x32xbf16>
    %cst_37 = arith.constant 0.000000e+00 : f32
    %78 = vector.broadcast %cst_37 : f32 to vector<8x128xf32>
    %79 = vector.extract_strided_slice %75 {offsets = [0, 0], sizes = [8, 16], strides = [1, 1]} : vector<8x32xbf16> to vector<8x16xbf16>
    %80 = vector.extract_strided_slice %76 {offsets = [0, 0], sizes = [16, 16], strides = [1, 1]} : vector<16x32xbf16> to vector<16x16xbf16>
    %81 = vector.extract_strided_slice %77 {offsets = [0, 0], sizes = [16, 16], strides = [1, 1]} : vector<16x32xbf16> to vector<16x16xbf16>
    %82 = vector.extract_strided_slice %24 {offsets = [0, 0], sizes = [16, 128], strides = [1, 1]} : vector<32x128xbf16> to vector<16x128xbf16>
    %cst_38 = arith.constant dense<0.000000e+00> : vector<8x16xf32>
    %83 = tpu.matmul %79, %80, %cst_38 {dimension_numbers = #tpu.dot_dimension_numbers<[1], [1], [0], [0], [0, 0, 1, 0], [], []>} : vector<8x16xbf16>, vector<16x16xbf16>, vector<8x16xf32> -> vector<8x16xf32>
    %cst_39 = arith.constant dense<0xFF800000> : vector<8xf32>
    %84 = vector.multi_reduction <maximumf>, %83, %cst_39 [1] : vector<8x16xf32> to vector<8xf32>
    %85 = vector.shape_cast %84 : vector<8xf32> to vector<8x1xf32>
    %86 = vector.broadcast %85 : vector<8x1xf32> to vector<8x16xf32>
    %87 = arith.subf %83, %86 : vector<8x16xf32>
    %88 = math.exp %87 : vector<8x16xf32>
    %cst_40 = arith.constant dense<0.000000e+00> : vector<8xf32>
    %89 = vector.multi_reduction <add>, %88, %cst_40 [1] : vector<8x16xf32> to vector<8xf32>
    %90 = vector.shape_cast %89 : vector<8xf32> to vector<8x1xf32>
    %91 = tpu.reciprocal %90 {approx = true} : vector<8x1xf32> -> vector<8x1xf32>
    %92 = vector.broadcast %91 : vector<8x1xf32> to vector<8x16xf32>
    %93 = arith.mulf %88, %92 : vector<8x16xf32>
    %94 = arith.truncf %93 : vector<8x16xf32> to vector<8x16xbf16>
    %cst_41 = arith.constant dense<0.000000e+00> : vector<8x16xf32>
    %95 = tpu.matmul %94, %81, %cst_41 {dimension_numbers = #tpu.dot_dimension_numbers<[1], [0], [0], [1], [0, 0, 1, 1], [], []>} : vector<8x16xbf16>, vector<16x16xbf16>, vector<8x16xf32> -> vector<8x16xf32>
    %96 = arith.truncf %95 : vector<8x16xf32> to vector<8x16xbf16>
    %cst_42 = arith.constant dense<0.000000e+00> : vector<8x128xf32>
    %97 = tpu.matmul %96, %82, %cst_42 {dimension_numbers = #tpu.dot_dimension_numbers<[1], [0], [0], [1], [0, 0, 1, 1], [], []>} : vector<8x16xbf16>, vector<16x128xbf16>, vector<8x128xf32> -> vector<8x128xf32>
    %98 = arith.addf %78, %97 : vector<8x128xf32>
    %99 = vector.extract_strided_slice %75 {offsets = [0, 16], sizes = [8, 16], strides = [1, 1]} : vector<8x32xbf16> to vector<8x16xbf16>
    %100 = vector.extract_strided_slice %76 {offsets = [0, 16], sizes = [16, 16], strides = [1, 1]} : vector<16x32xbf16> to vector<16x16xbf16>
    %101 = vector.extract_strided_slice %77 {offsets = [0, 16], sizes = [16, 16], strides = [1, 1]} : vector<16x32xbf16> to vector<16x16xbf16>
    %102 = vector.extract_strided_slice %24 {offsets = [16, 0], sizes = [16, 128], strides = [1, 1]} : vector<32x128xbf16> to vector<16x128xbf16>
    %cst_43 = arith.constant dense<0.000000e+00> : vector<8x16xf32>
    %103 = tpu.matmul %99, %100, %cst_43 {dimension_numbers = #tpu.dot_dimension_numbers<[1], [1], [0], [0], [0, 0, 1, 0], [], []>} : vector<8x16xbf16>, vector<16x16xbf16>, vector<8x16xf32> -> vector<8x16xf32>
    %cst_44 = arith.constant dense<0xFF800000> : vector<8xf32>
    %104 = vector.multi_reduction <maximumf>, %103, %cst_44 [1] : vector<8x16xf32> to vector<8xf32>
    %105 = vector.shape_cast %104 : vector<8xf32> to vector<8x1xf32>
    %106 = vector.broadcast %105 : vector<8x1xf32> to vector<8x16xf32>
    %107 = arith.subf %103, %106 : vector<8x16xf32>
    %108 = math.exp %107 : vector<8x16xf32>
    %cst_45 = arith.constant dense<0.000000e+00> : vector<8xf32>
    %109 = vector.multi_reduction <add>, %108, %cst_45 [1] : vector<8x16xf32> to vector<8xf32>
    %110 = vector.shape_cast %109 : vector<8xf32> to vector<8x1xf32>
    %111 = tpu.reciprocal %110 {approx = true} : vector<8x1xf32> -> vector<8x1xf32>
    %112 = vector.broadcast %111 : vector<8x1xf32> to vector<8x16xf32>
    %113 = arith.mulf %108, %112 : vector<8x16xf32>
    %114 = arith.truncf %113 : vector<8x16xf32> to vector<8x16xbf16>
    %cst_46 = arith.constant dense<0.000000e+00> : vector<8x16xf32>
    %115 = tpu.matmul %114, %101, %cst_46 {dimension_numbers = #tpu.dot_dimension_numbers<[1], [0], [0], [1], [0, 0, 1, 1], [], []>} : vector<8x16xbf16>, vector<16x16xbf16>, vector<8x16xf32> -> vector<8x16xf32>
    %116 = arith.truncf %115 : vector<8x16xf32> to vector<8x16xbf16>
    %cst_47 = arith.constant dense<0.000000e+00> : vector<8x128xf32>
    %117 = tpu.matmul %116, %102, %cst_47 {dimension_numbers = #tpu.dot_dimension_numbers<[1], [0], [0], [1], [0, 0, 1, 1], [], []>} : vector<8x16xbf16>, vector<16x128xbf16>, vector<8x128xf32> -> vector<8x128xf32>
    %118 = arith.addf %98, %117 : vector<8x128xf32>
    %119 = vector.broadcast %25 : vector<1x128xf32> to vector<8x128xf32>
    %120 = arith.addf %118, %119 : vector<8x128xf32>
    %c1 = arith.constant 1 : index
    %c0_48 = arith.constant 0 : index
    %c0_49 = arith.constant 0 : index
    %121 = vector.load %arg11[%c1, %c0_48, %c0_49] : memref<2x8x128xf32, #tpu.memory_space<vmem>>, vector<1x8x128xf32>
    %122 = vector.shape_cast %121 : vector<1x8x128xf32> to vector<8x128xf32>
    %123 = vector.shape_cast %120 : vector<8x128xf32> to vector<1x8x128xf32>
    tpu.vector_store %arg11[%c1, %c0_48, %c0_49], %123 {strides = array<i32>} : memref<2x8x128xf32, #tpu.memory_space<vmem>>, vector<1x8x128xf32>,
    return
  }
  func.func @transform_0(%arg0: i32) -> (i32, i32, i32) {
    %c0_i32 = arith.constant 0 : i32
    %c0_i32_0 = arith.constant 0 : i32
    %c0_i32_1 = arith.constant 0 : i32
    return %arg0, %c0_i32, %c0_i32_0 : i32, i32, i32
  }
  func.func @transform_1(%arg0: i32) -> (i32, i32, i32) {
    %c0_i32 = arith.constant 0 : i32
    %c0_i32_0 = arith.constant 0 : i32
    %c0_i32_1 = arith.constant 0 : i32
    return %arg0, %c0_i32, %c0_i32_0 : i32, i32, i32
  }
  func.func @transform_2(%arg0: i32) -> (i32, i32) {
    %c0_i32 = arith.constant 0 : i32
    %c0_i32_0 = arith.constant 0 : i32
    %c0_i32_1 = arith.constant 0 : i32
    return %c0_i32, %c0_i32_0 : i32, i32
  }
  func.func @transform_3(%arg0: i32) -> (i32, i32) {
    %c0_i32 = arith.constant 0 : i32
    %c0_i32_0 = arith.constant 0 : i32
    %c0_i32_1 = arith.constant 0 : i32
    return %c0_i32, %c0_i32_0 : i32, i32
  }
  func.func @transform_4(%arg0: i32) -> (i32, i32) {
    %c0_i32 = arith.constant 0 : i32
    %c0_i32_0 = arith.constant 0 : i32
    %c0_i32_1 = arith.constant 0 : i32
    return %c0_i32, %c0_i32_0 : i32, i32
  }
  func.func @transform_5(%arg0: i32) -> (i32, i32) {
    %c0_i32 = arith.constant 0 : i32
    %c0_i32_0 = arith.constant 0 : i32
    %c0_i32_1 = arith.constant 0 : i32
    return %c0_i32, %c0_i32_0 : i32, i32
  }
  func.func @transform_6(%arg0: i32) -> (i32, i32) {
    %c0_i32 = arith.constant 0 : i32
    %c0_i32_0 = arith.constant 0 : i32
    %c0_i32_1 = arith.constant 0 : i32
    return %c0_i32, %c0_i32_0 : i32, i32
  }
  func.func @transform_7(%arg0: i32) -> (i32, i32) {
    %c0_i32 = arith.constant 0 : i32
    %c0_i32_0 = arith.constant 0 : i32
    %c0_i32_1 = arith.constant 0 : i32
    return %c0_i32, %c0_i32_0 : i32, i32
  }
  func.func @transform_8(%arg0: i32) -> (i32, i32) {
    %c0_i32 = arith.constant 0 : i32
    %c0_i32_0 = arith.constant 0 : i32
    %c0_i32_1 = arith.constant 0 : i32
    return %c0_i32, %c0_i32_0 : i32, i32
  }
  func.func @transform_9(%arg0: i32) -> (i32, i32) {
    %c0_i32 = arith.constant 0 : i32
    %c0_i32_0 = arith.constant 0 : i32
    %c0_i32_1 = arith.constant 0 : i32
    return %c0_i32, %c0_i32_0 : i32, i32
  }
  func.func @transform_10(%arg0: i32) -> (i32, i32, i32) {
    %c0_i32 = arith.constant 0 : i32
    %c0_i32_0 = arith.constant 0 : i32
    %c0_i32_1 = arith.constant 0 : i32
    return %arg0, %c0_i32, %c0_i32_0 : i32, i32, i32
  }
}

</mosaic_0001>

<bundles_post_ra>
// kernel: tpu_custom_call.1
= control target key start
LH: loop header
LB: loop body
LE: loop exit
PB: predicated region body
PF: predicated region fallthrough
CT: control target
= control target key end

     0   :  { %15 = vsyncpa [#allocation3], 0  ;;  %s1597_s0 = inlined_call_operand.hbm [shape: f32[2,8,32], index: 0, kind: input, shape index: {}]   ;;  %s1598_s1 = inlined_call_operand.hbm [shape: f32[2,16,24], index: 1, kind: input, shape index: {}]   ;;  %s1599_s2 = inlined_call_operand.hbm [shape: bf16[32,32], index: 2, kind: input, shape index: {}]   ;;  %s1600_s3 = inlined_call_operand.vmem [shape: f32[1,32], index: 3, kind: input, shape index: {}]   ;;  %s1601_s4 = inlined_call_operand.vmem [shape: bf16[24,32], index: 4, kind: input, shape index: {}]   ;;  %s1602_s5 = inlined_call_operand.vmem [shape: f32[1,32], index: 5, kind: input, shape index: {}]   ;;  %s1603_s6 = inlined_call_operand.hbm [shape: bf16[24,32], index: 6, kind: input, shape index: {}]   ;;  %s1604_s7 = inlined_call_operand.hbm [shape: f32[1,32], index: 7, kind: input, shape index: {}]   ;;  %s1605_s8 = inlined_call_operand.vmem [shape: bf16[32,128], index: 8, kind: input, shape index: {}]   ;;  %s1606_s9 = inlined_call_operand.vmem [shape: f32[1,128], index: 9, kind: input, shape index: {}]   ;;  %s1607_s10 = inlined_call_operand.hbm [shape: f32[2,8,128], index: 10, kind: output, shape index: {}]  }
   0x1   :  { %16 = vsyncpa [#allocation6], 0 }
   0x2   :  { %17 = vsyncpa [#allocation9], 0 }
   0x3   :  { %18 = vsyncpa [#allocation4], 0  ;;  %s1322_s13 = smov [#allocation5]   ;;  %s1182_s17 = scalar_lea.hbm %s1598_s1, 512 }
   0x4   :  { %s36_s14 = sshll.u32 %s1322_s13, 4  ;;  %p1183_p0 = scmp.ne.s32.totalorder %s1598_s1, %s1182_s17  ;;  %s37_s14 = int_to_ptr.vmem [resolvable:$true] %s36_s14 }
   0x5   :  { %p1186_p1 = scmp.lt.u32.totalorder %s1182_s17, %s1598_s1 }
   0x7   :  { %p1188_p2 = pnand %p1186_p1, %p1183_p0 }
   0x9   :  { %1191 = shalt.err (!%p1188_p2)
}
   0xa   :  { %s1192_s22 = scalar_lea.vmem %s37_s14, 512  ;;  %p1197_p4 = scmp.lt.s32.totalorder %s37_s14, %s37_s14 }
   0xb   :  { %p1193_p3 = scmp.ne.s32.totalorder %s37_s14, %s1192_s22  ;;  %p1198_p5 = scmp.lt.s32.totalorder %s1192_s22, %s1192_s22 }
   0xd   :  { %p1199_p6 = por %p1198_p5, %p1197_p4 }
   0xf   :  { %p1200_p7 = pnand %p1199_p6, %p1193_p3 }
  0x11   :  { %1203 = shalt.err (!%p1200_p7)
}
  0x12   :  { %s1323_s23 = smov 128   ;;  %s1324_s24 = smov 8  }
  0x13   :  { %42 = dma.hbm_to_vmem [thread:$0]  %s1598_s1, 512, %s37_s14, [#allocation6], %s1323_s23, %s1323_s23, %s1324_s24  }
  0x14   :  { %s1325_s27 = smov [#allocation8]   ;;  %s1326_s29 = smov [#allocation2]  }
  0x15   :  { %s66_s28 = sshll.u32 %s1325_s27, 4  ;;  %s24_s30 = sshll.u32 %s1326_s29, 4  ;;  %s67_s28 = int_to_ptr.vmem [resolvable:$true] %s66_s28  ;;  %s25_s30 = int_to_ptr.vmem [resolvable:$true] %s24_s30 }
  0x16   :  { %s1204_s13 = scalar_lea.hbm %s1603_s6, 192 }
  0x17   :  { %p1205_p8 = scmp.ne.s32.totalorder %s1603_s6, %s1204_s13  ;;  %p1208_p9 = scmp.lt.u32.totalorder %s1204_s13, %s1603_s6 }
  0x19   :  { %p1210_p10 = pnand %p1208_p9, %p1205_p8 }
  0x1b   :  { %1213 = shalt.err (!%p1210_p10)
}
  0x1c   :  { %s1214_s1 = scalar_lea.vmem %s67_s28, 192  ;;  %p1219_p12 = scmp.lt.s32.totalorder %s67_s28, %s67_s28 }
  0x1d   :  { %p1215_p11 = scmp.ne.s32.totalorder %s67_s28, %s1214_s1  ;;  %p1220_p13 = scmp.lt.s32.totalorder %s1214_s1, %s1214_s1 }
  0x1f   :  { %p1221_p0 = por %p1220_p13, %p1219_p12 }
  0x21   :  { %p1222_p1 = pnand %p1221_p0, %p1215_p11 }
  0x23   :  { %1225 = shalt.err (!%p1222_p1)
}
  0x24   :  { %s1327_s14 = smov 64   ;;  %s1328_s19 = smov 4  }
  0x25   :  { %72 = dma.hbm_to_vmem [thread:$0]  %s1603_s6, 192, %s67_s28, [#allocation9], %s1327_s14, %s1327_s14, %s1328_s19  }
  0x26   :  { %s1226_s26 = scalar_lea.hbm %s1597_s0, 256 }
  0x27   :  { %p1227_p2 = scmp.ne.s32.totalorder %s1597_s0, %s1226_s26  ;;  %p1230_p3 = scmp.lt.u32.totalorder %s1226_s26, %s1597_s0 }
  0x29   :  { %p1232_p4 = pnand %p1230_p3, %p1227_p2 }
  0x2b   :  { %1235 = shalt.err (!%p1232_p4)
}
  0x2c   :  { %s1236_s13 = scalar_lea.vmem %s25_s30, 256  ;;  %p1241_p6 = scmp.lt.s32.totalorder %s25_s30, %s25_s30 }
  0x2d   :  { %p1237_p5 = scmp.ne.s32.totalorder %s25_s30, %s1236_s13  ;;  %p1242_p7 = scmp.lt.s32.totalorder %s1236_s13, %s1236_s13 }
  0x2f   :  { %p1243_p8 = por %p1242_p7, %p1241_p6 }
  0x31   :  { %p1244_p9 = pnand %p1243_p8, %p1237_p5 }
  0x33   :  { %1247 = shalt.err (!%p1244_p9)
}
  0x34   :  { %30 = dma.hbm_to_vmem [thread:$0]  %s1597_s0, 256, %s25_s30, [#allocation3], %s1323_s23, %s1323_s23, %s1324_s24  }
  0x35   :  { %s1329_s15 = smov [#allocation7]   ;;  %s1330_s17 = smov [#allocation10]  }
  0x36   :  { %s48_s16 = sshll.u32 %s1329_s15, 4  ;;  %s79_s18 = sshll.u32 %s1330_s17, 4  ;;  %s49_s16 = int_to_ptr.vmem [resolvable:$true] %s48_s16  ;;  %s80_s18 = int_to_ptr.vmem [resolvable:$true] %s79_s18 }
  0x37   :  { %s1248_s21 = scalar_lea.hbm %s1599_s2, 256 }
  0x38   :  { %p1249_p10 = scmp.ne.s32.totalorder %s1599_s2, %s1248_s21  ;;  %p1252_p11 = scmp.lt.u32.totalorder %s1248_s21, %s1599_s2 }
  0x3a   :  { %p1254_p12 = pnand %p1252_p11, %p1249_p10 }
  0x3c   :  { %1257 = shalt.err (!%p1254_p12)
}
  0x3d   :  { %s1258_s0 = scalar_lea.vmem %s49_s16, 256  ;;  %p1263_p0 = scmp.lt.s32.totalorder %s49_s16, %s49_s16 }
  0x3e   :  { %p1259_p13 = scmp.ne.s32.totalorder %s49_s16, %s1258_s0  ;;  %p1264_p1 = scmp.lt.s32.totalorder %s1258_s0, %s1258_s0 }
  0x40   :  { %p1265_p2 = por %p1264_p1, %p1263_p0 }
  0x42   :  { %p1266_p3 = pnand %p1265_p2, %p1259_p13 }
  0x44   :  { %1269 = shalt.err (!%p1266_p3)
}
  0x45   :  { %54 = dma.hbm_to_vmem [thread:$0]  %s1599_s2, 256, %s49_s16, [#allocation6], %s1327_s14, %s1327_s14, %s1328_s19  }
  0x46   :  { %s1270_s13 = scalar_lea.hbm %s1604_s7, 16 }
  0x47   :  { %p1271_p4 = scmp.ne.s32.totalorder %s1604_s7, %s1270_s13  ;;  %p1274_p5 = scmp.lt.u32.totalorder %s1270_s13, %s1604_s7 }
  0x49   :  { %p1276_p6 = pnand %p1274_p5, %p1271_p4 }
  0x4b   :  { %1279 = shalt.err (!%p1276_p6)
}
  0x4c   :  { %s1280_s1 = scalar_lea.vmem %s80_s18, 16  ;;  %s1284_s20 = scalar_lea.vmem %s80_s18, 32 }
  0x4d   :  { %p1281_p7 = scmp.ne.s32.totalorder %s80_s18, %s1280_s1  ;;  %p1285_p8 = scmp.lt.s32.totalorder %s80_s18, %s80_s18 }
  0x4e   :  { %p1286_p9 = scmp.lt.s32.totalorder %s1284_s20, %s1280_s1 }
  0x50   :  { %p1287_p10 = por %p1286_p9, %p1285_p8 }
  0x52   :  { %p1288_p11 = pnand %p1287_p10, %p1281_p7 }
  0x54   :  { %1291 = shalt.err (!%p1288_p11)
}
  0x55   :  { %82 = dma.hbm_to_vmem [thread:$0]  %s1604_s7, 16, %s80_s18, [#allocation9]  }
  0x56   :  { %1314 = dma.done.wait [#allocation3], 256  }
  0x57   :  { %1315 = vsyncadd [#allocation3], 4294967040 }
  0x58   :  { %1316 = dma.done.wait [#allocation6], 768  }
  0x59   :  { %1317 = vsyncadd [#allocation6], 4294966528 }
  0x5a   :  { %1318 = dma.done.wait [#allocation9], 208  }
  0x5b   :  { %1319 = vsyncadd [#allocation9], 4294967088  ;;  %v1331_v0 = vmov 0.0   ;;  %vm1332_vm0 = vmmov 0   ;;  %v1158_v1 = vld [vmem:[%s1601_s4] sm:$0xff]   ;;  %vm206_vm1 = vcmask 1043456  }
  0x5c   :  { %1047 = vmatprep.subr.bf16.mxu0 %v1331_v0  ;;  %1051 = vmatprep.mubr.msk.bf16.mxu0 %vm1332_vm0, %v1331_v0  ;;  %v1159_v2 = vld [vmem:[%s1601_s4 + $0x8] ss:$0 sps:$4 sm:$0xff]   ;;  %v106_v3 = vld [vmem:[#allocation5] sm:$0xff]  ;;  %v107_v4 = vld [vmem:[#allocation5 + $0x8] sm:$0xff]  ;;  %vm199_vm2 = vcmask 195584   ;;  %vm135_vm3 = vcmask 261120  }
  0x5d   :  { %1055 = vmatprep.subr.bf16.mxu1 %v1158_v1  ;;  %v110_v5 = vpack.c.bf16 %v107_v4, %v106_v3  ;;  %v1160_v6 = vld [vmem:[#allocation7] sm:$0xff]   ;;  %v108_v7 = vld [vmem:[#allocation5 + $0x10] sm:$0xff]  ;;  %v109_v8 = vld [vmem:[#allocation5 + $0x18] sm:$0xff]  ;;  %v208_v9 = vsel %vm206_vm1, %v1159_v2, 0  ;;  %vm340_vm4 = vcmask 130048  }
  0x5e   :  { %1056 = vmatpush3.bf16.msra.mxu1 %v1158_v1  ;;  %v1161_v10 = vld [vmem:[#allocation7 + $0x8] sm:$0xff]   ;;  %1048 = vmatpush3.bf16.msra.mxu0 %v1160_v6  ;;  %v103_v11 = vld [vmem:[#allocation2] sm:$0xff]  ;;  %v104_v12 = vld [vmem:[#allocation2 + $0x8] sm:$0xff]  ;;  %v111_v13 = vpack.c.bf16 %v109_v8, %v108_v7 }
  0x5f   :  { %1143 = vmatprep.subr.msk.bf16.mxu1 %vm206_vm1, %v1159_v2  ;;  %1059 = vmatprep.mubr.msk.bf16.mxu1 %vm199_vm2, %v110_v5  ;;  %v105_v14 = vpack.c.bf16 %v104_v12, %v103_v11  ;;  %v987_v15 = vld [vmem:[%s1602_s5] ss:$0 sm:$0xff]  ;;  %v1163_v36 = vld [vmem:[#allocation8 + $0x8] ss:$0 sps:$4 sm:$0xff]   ;;  %v992_v55 = vld [vmem:[#allocation10] ss:$0 sm:$0xff] }
  0x60   :  { %1049 = vmatprep.subr.bf16.mxu0 %v1331_v0  ;;  %v983_v17 = vld [vmem:[%s1600_s3] ss:$0 sm:$0xff]  ;;  %s1333_s3 = smov 112   ;;  %v279_v37 = vsel %vm206_vm1, %v1163_v36, 0 }
  0x61   :  { %v1162_v35 = vld [vmem:[#allocation8] sm:$0xff]  }
  0x62   :  { %1058 = vmatpush3.bf16.msra.mxu1 %v208_v9  ;;  %1050 = vmatpush3.bf16.msra.mxu0 %v1161_v10 }
  0x63   :  { %1071 = vmatprep.subr.bf16.mxu1 %v1331_v0  ;;  %1063 = vmatprep.subr.bf16.mxu0 %v1162_v35 }
  0x65   :  { %1060 = vmatmul.mubr.msk.bf16.vlgmr.msra.gmra.mrb[0].mxu1 %vm199_vm2, %v111_v13  ;;  %1052 = vmatmul.mubr.msk.bf16.vlgmr.msra.gmra.mrb[0].mxu0 %vm135_vm3, %v105_v14  ;;  %v1165_v14 = vld [vmem:[%s1605_s8 + $0x8] sm:$0xff]  }
  0x66   :  { %1073 = vmatprep.mubr.msk.bf16.mxu1 %vm1332_vm0, %v1331_v0  ;;  %1067 = vmatprep.mubr.msk.bf16.mxu0 %vm199_vm2, %v110_v5 }
  0x67   :  { %1064 = vmatpush3.bf16.msra.mxu0 %v1162_v35 }
  0x68   :  { %1144 = vmatprep.subr.msk.bf16.mxu0 %vm206_vm1, %v1163_v36 }
  0x6b   :  { %1066 = vmatpush3.bf16.msra.mxu0 %v279_v37 }
  0x6c   :  { %1077 = vmatprep.subr.bf16.mxu0 %v1331_v0 }
  0x6e   :  { %1068 = vmatmul.mubr.msk.bf16.vlgmr.msra.gmra.mrb[4].mxu0 %vm199_vm2, %v111_v13 }
  0x6f   :  { %1079 = vmatprep.mubr.msk.bf16.mxu0 %vm1332_vm0, %v1331_v0 }
 0x138   :  { %v1061_v16 = vpop.f32.mrb[0].mxu1  ;;  %v173_v21 = vpop.f32.mrb[0].mxu0 }
 0x139   :  { %v253_v18 = vadd.f32 %v1061_v16, %v987_v15  ;;  %v244_v19 = vpop.f32.mrb[1].mxu1  ;;  %v174_v24 = vadd.f32 %v983_v17, %v173_v21  ;;  %v1053_v25 = vpop.f32.mrb[1].mxu0 }
 0x13a   :  { %v1062_v20 = vpop.f32.mrb[2].mxu1  ;;  %v245_v26 = vadd.f32 %v987_v15, %v244_v19  ;;  %v176_v28 = vpop.f32.mrb[2].mxu0  ;;  %v1533_v19 = vld [vmem:[%s1605_s8] sm:$0xff]  }
 0x13b   :  { %v256_v22 = vadd.f32 %v1062_v20, %v987_v15  ;;  %v247_v23 = vpop.f32.mrb[3].mxu1  ;;  %v177_v30 = vadd.f32 %v983_v17, %v176_v28  ;;  %v1054_v31 = vpop.f32.mrb[3].mxu0 }
 0x13c   :  { %v248_v27 = vadd.f32 %v987_v15, %v247_v23 }
 0x13d   :  { %v1486_v29 = vpack.c.bf16 %v256_v22, %v253_v18  ;;  %v1488_v33 = vpack.c.bf16 %v177_v30, %v174_v24 }
 0x13e   :  { %v331_v32 = vpack.c.bf16 %v248_v27, %v245_v26 }
 0x13f   :  { %v661_v9 = vrot.slane %v1488_v33, 4 }
 0x140   :  { %447 = vrot.lane.b32.xlu0 %v331_v32, %s1333_s3  ;;  %v345_v34 = vsel %vm340_vm4, %v331_v32, 0  ;;  %v666_v32 = vsel %vm340_vm4, %v1486_v29, 0 }
 0x141   :  { %1072 = vmatpush3.bf16.xpose.msra.mxu1 %v345_v34  ;;  %v1069_v54 = vpop.f32.mrb[4].mxu0 }
 0x142   :  { %1083 = vmatprep.subr.bf16.mxu1 %v1331_v0  ;;  %v324_v56 = vadd.f32 %v1069_v54, %v992_v55  ;;  %v315_v57 = vpop.f32.mrb[5].mxu0 }
 0x143   :  { %v316_v58 = vadd.f32 %v992_v55, %v315_v57  ;;  %v1070_v59 = vpop.f32.mrb[6].mxu0 }
 0x144   :  { %444 = vrot.lane.b32.xlu0 %v1488_v33, %s1333_s3  ;;  %v327_v60 = vadd.f32 %v1070_v59, %v992_v55  ;;  %v318_v61 = vpop.f32.mrb[7].mxu0 }
 0x145   :  { %v319_v62 = vadd.f32 %v992_v55, %v318_v61 }
 0x146   :  { %v1512_v63 = vpack.c.bf16 %v327_v60, %v324_v56 }
 0x147   :  { %v333_v1 = vpack.c.bf16 %v319_v62, %v316_v58 }
 0x148   :  { %1074 = vmatmul.mubr.msk.bf16.vlgmr.msra.gmra.mrb[4].mxu1 %vm340_vm4, %v1488_v33 }
 0x149   :  { %1085 = vmatprep.mubr.msk.bf16.mxu1 %vm1332_vm0, %v1331_v0  ;;  %1078 = vmatpush3.bf16.msra.mxu0 %v333_v1 }
 0x14a   :  { %1089 = vmatprep.subr.bf16.mxu0 %v1331_v0 }
 0x1b2   :  { %v448_v38 = vpop.permute.xlu0 %447 }
 0x1b3   :  { %v453_v39 = vsel %vm340_vm4, %v448_v38, 0 }
 0x1b4   :  { %1084 = vmatpush3.bf16.xpose.msra.mxu1 %v453_v39  ;;  %v1562_v39 = vld [vmem:[%s1606_s9] ss:$0 sm:$0xff]  ;;  %s1334_s9 = smov [#allocation11]  }
 0x1b5   :  { %1095 = vmatprep.subr.bf16.mxu1 %v1331_v0  ;;  %s969_s29 = sshll.u32 %s1334_s9, 4  ;;  %s970_s29 = int_to_ptr.vmem [resolvable:$true] %s969_s29 }
 0x1b6   :  { %v445_v40 = vpop.permute.xlu0 %444  ;;  %s1292_s11 = scalar_lea.vmem %s970_s29, 256  ;;  %p1297_p13 = scmp.lt.s32.totalorder %s970_s29, %s970_s29 }
 0x1b7   :  { %p1293_p12 = scmp.ne.s32.totalorder %s970_s29, %s1292_s11  ;;  %p1298_p0 = scmp.lt.s32.totalorder %s1292_s11, %s1292_s11 }
 0x1b9   :  { %p1299_p1 = por %p1298_p0, %p1297_p13 }
 0x1bb   :  { %1086 = vmatmul.mubr.msk.bf16.vlgmr.msra.gmra.mrb[8].mxu1 %vm340_vm4, %v445_v40  ;;  %p1300_p2 = pnand %p1299_p1, %p1293_p12 }
 0x1bc   :  { %1097 = vmatprep.mubr.msk.bf16.mxu1 %vm1332_vm0, %v1331_v0  ;;  %1096 = vmatpush3.bf16.msra.mxu1 %v1165_v14 }
 0x1bd   :  { %1107 = vmatprep.subr.bf16.mxu1 %v1331_v0 }
 0x21b   :  { %v381_v41 = vpop.f32.mrb[4].mxu1 }
 0x21c   :  { %v1075_v42 = vpop.f32.mrb[5].mxu1  ;;  %v387_v43 = vsel %vm340_vm4, %v381_v41, -inf }
 0x21d   :  { %388 = vmax.xlane.f32.xlu1 %v387_v43  ;;  %v384_v44 = vpop.f32.mrb[6].mxu1 }
 0x21e   :  { %v1076_v45 = vpop.f32.mrb[7].mxu1 }
 0x28e   :  { %v489_v46 = vpop.f32.mrb[8].mxu1 }
 0x28f   :  { %v1087_v47 = vpop.f32.mrb[9].mxu1  ;;  %v495_v48 = vsel %vm340_vm4, %v489_v46, -inf }
 0x290   :  { %496 = vmax.xlane.f32.xlu1 %v495_v48  ;;  %v492_v49 = vpop.f32.mrb[10].mxu1 }
 0x291   :  { %v1088_v50 = vpop.f32.mrb[11].mxu1 }
 0x2aa   :  { %v389_v51 = vpop.xlane.xlu1 %388 }
 0x2ab   :  { %v390_v52 = vsub.f32 %v381_v41, %v389_v51 }
 0x2ad   :  { %v391_v53 = vmul.f32 1.442695, %v390_v52 }
 0x2af   :  { %1166 = vpow2.f32 %v391_v53 }
 0x2b9   :  { %v1167_v2 = vpop.eup %1166 }
 0x2ba   :  { %v393_v3 = vsel %vm340_vm4, %v1167_v2, 0.0 }
 0x2bb   :  { %394 = vadd.xlane.f32.xlu0 %v393_v3 }
 0x31d   :  { %v497_v4 = vpop.xlane.xlu1 %496 }
 0x31e   :  { %v498_v5 = vsub.f32 %v489_v46, %v497_v4 }
 0x320   :  { %v499_v6 = vmul.f32 1.442695, %v498_v5 }
 0x322   :  { %1168 = vpow2.f32 %v499_v6 }
 0x32c   :  { %v1169_v7 = vpop.eup %1168 }
 0x32d   :  { %v501_v8 = vsel %vm340_vm4, %v1169_v7, 0.0 }
 0x32e   :  { %502 = vadd.xlane.f32.xlu1 %v501_v8 }
 0x33f   :  { %508 = vrot.lane.b32.xlu1 %v333_v1, %s1333_s3 }
 0x343   :  { %767 = vrot.lane.b32.xlu1 %v1486_v29, %s1333_s3 }
 0x347   :  { %764 = vrot.lane.b32.xlu1 %v661_v9, %s1333_s3 }
 0x348   :  { %v395_v10 = vpop.xlane.xlu0 %394 }
 0x349   :  { %1170 = vrcp.f32 %v395_v10 }
 0x353   :  { %v1171_v11 = vpop.eup %1170 }
 0x354   :  { %v397_v12 = vmul.f32 %v1171_v11, %v1167_v2 }
 0x356   :  { %v398_v13 = vpack.c.bf16 %v397_v12, %v397_v12 }
 0x358   :  { %1080 = vmatmul.mubr.msk.bf16.vlgmr.msra.gmra.mrb[8].mxu0 %vm340_vm4, %v398_v13 }
 0x359   :  { %1091 = vmatprep.mubr.msk.bf16.mxu0 %vm1332_vm0, %v1331_v0 }
 0x3bb   :  { %v503_v15 = vpop.xlane.xlu1 %502 }
 0x3bc   :  { %1172 = vrcp.f32 %v503_v15 }
 0x3bf   :  { %v509_v16 = vpop.permute.xlu1 %508 }
 0x3c0   :  { %1090 = vmatpush3.bf16.msra.mxu0 %v509_v16 }
 0x3c1   :  { %1101 = vmatprep.subr.bf16.mxu0 %v1331_v0 }
 0x3c3   :  { %v768_v33 = vpop.permute.xlu1 %767 }
 0x3c4   :  { %v773_v34 = vsel %vm340_vm4, %v768_v33, 0 }
 0x3c6   :  { %v1173_v17 = vpop.eup %1172 }
 0x3c7   :  { %v505_v18 = vmul.f32 %v1173_v17, %v1169_v7  ;;  %v765_v35 = vpop.permute.xlu1 %764 }
 0x3c9   :  { %v506_v20 = vpack.c.bf16 %v505_v18, %v505_v18 }
 0x3cb   :  { %1092 = vmatmul.mubr.msk.bf16.vlgmr.msra.gmra.mrb[12].mxu0 %vm340_vm4, %v506_v20 }
 0x3cc   :  { %1102 = vmatpush3.bf16.msra.mxu0 %v1533_v19  ;;  %1103 = vmatprep.mubr.msk.bf16.mxu0 %vm1332_vm0, %v1331_v0 }
 0x3cd   :  { %1113 = vmatprep.subr.bf16.mxu0 %v1331_v0 }
 0x42b   :  { %v436_v21 = vpop.f32.mrb[8].mxu0 }
 0x42c   :  { %v442_v22 = vpack.c.bf16 %v436_v21, %v436_v21  ;;  %v1081_v23 = vpop.f32.mrb[9].mxu0 }
 0x42d   :  { %v439_v24 = vpop.f32.mrb[10].mxu0 }
 0x42e   :  { %v1082_v25 = vpop.f32.mrb[11].mxu0  ;;  %1104 = vmatmul.mubr.msk.bf16.vlgmr.msra.gmra.mrb[16].mxu0 %vm340_vm4, %v442_v22 }
 0x42f   :  { %1114 = vmatpush3.bf16.msra.mxu0 %v1512_v63  ;;  %1115 = vmatprep.mubr.msk.bf16.mxu0 %vm1332_vm0, %v1331_v0 }
 0x430   :  { %1125 = vmatprep.subr.bf16.mxu0 %v1331_v0 }
 0x49e   :  { %v548_v26 = vpop.f32.mrb[12].mxu0 }
 0x49f   :  { %v554_v27 = vpack.c.bf16 %v548_v26, %v548_v26  ;;  %v1093_v28 = vpop.f32.mrb[13].mxu0 }
 0x4a0   :  { %v551_v30 = vpop.f32.mrb[14].mxu0 }
 0x4a1   :  { %v1094_v31 = vpop.f32.mrb[15].mxu0  ;;  %1098 = vmatmul.mubr.msk.bf16.vlgmr.msra.gmra.mrb[12].mxu1 %vm340_vm4, %v554_v27 }
 0x4a2   :  { %1108 = vmatpush3.bf16.xpose.msra.mxu1 %v666_v32  ;;  %1109 = vmatprep.mubr.msk.bf16.mxu1 %vm1332_vm0, %v1331_v0 }
 0x4a3   :  { %1119 = vmatprep.subr.bf16.mxu1 %v1331_v0 }
 0x4a9   :  { %1110 = vmatmul.mubr.msk.bf16.vlgmr.msra.gmra.mrb[16].mxu1 %vm340_vm4, %v661_v9 }
 0x4aa   :  { %1120 = vmatpush3.bf16.xpose.msra.mxu1 %v773_v34  ;;  %1121 = vmatprep.mubr.msk.bf16.mxu1 %vm1332_vm0, %v1331_v0 }
 0x4ab   :  { %1131 = vmatprep.subr.bf16.mxu1 %v1331_v0 }
 0x4b1   :  { %1122 = vmatmul.mubr.msk.bf16.vlgmr.msra.gmra.mrb[20].mxu1 %vm340_vm4, %v765_v35 }
 0x4b2   :  { %1132 = vmatpush3.bf16.msra.mxu1 %v1165_v14  ;;  %1133 = vmatprep.mubr.msk.bf16.mxu1 %vm1332_vm0, %v1331_v0 }
 0x501   :  { %v647_v29 = vpop.f32.mrb[16].mxu0 }
 0x502   :  { %v1105_v36 = vpop.f32.mrb[17].mxu0 }
 0x503   :  { %v650_v37 = vpop.f32.mrb[18].mxu0 }
 0x504   :  { %v1106_v38 = vpop.f32.mrb[19].mxu0 }
 0x574   :  { %v598_v40 = vpop.f32.mrb[12].mxu1 }
 0x575   :  { %v648_v41 = vadd.f32 %v647_v29, %v598_v40  ;;  %v1099_v42 = vpop.f32.mrb[13].mxu1 }
 0x576   :  { %v601_v43 = vpop.f32.mrb[14].mxu1 }
 0x577   :  { %v659_v44 = vadd.f32 %v1562_v39, %v648_v41  ;;  %v1100_v45 = vpop.f32.mrb[15].mxu1 }
 0x579   :  { %660 = vst [vmem:[#allocation11] sm:$0xff] %v659_v44 }
 0x57c   :  { %v702_v46 = vpop.f32.mrb[16].mxu1 }
 0x57d   :  { %v1111_v47 = vpop.f32.mrb[17].mxu1  ;;  %v708_v48 = vsel %vm340_vm4, %v702_v46, -inf }
 0x57e   :  { %709 = vmax.xlane.f32.xlu1 %v708_v48  ;;  %v705_v49 = vpop.f32.mrb[18].mxu1 }
 0x57f   :  { %v1112_v50 = vpop.f32.mrb[19].mxu1 }
 0x584   :  { %v809_v51 = vpop.f32.mrb[20].mxu1 }
 0x585   :  { %v1123_v52 = vpop.f32.mrb[21].mxu1  ;;  %v815_v53 = vsel %vm340_vm4, %v809_v51, -inf }
 0x586   :  { %816 = vmax.xlane.f32.xlu0 %v815_v53  ;;  %v812_v54 = vpop.f32.mrb[22].mxu1 }
 0x587   :  { %v1124_v55 = vpop.f32.mrb[23].mxu1 }
 0x60b   :  { %v710_v56 = vpop.xlane.xlu1 %709 }
 0x60c   :  { %v711_v57 = vsub.f32 %v702_v46, %v710_v56 }
 0x60e   :  { %v712_v58 = vmul.f32 1.442695, %v711_v57 }
 0x610   :  { %1174 = vpow2.f32 %v712_v58 }
 0x613   :  { %v817_v59 = vpop.xlane.xlu0 %816 }
 0x614   :  { %v818_v60 = vsub.f32 %v809_v51, %v817_v59 }
 0x616   :  { %v819_v61 = vmul.f32 1.442695, %v818_v60 }
 0x618   :  { %1176 = vpow2.f32 %v819_v61 }
 0x61a   :  { %v1175_v62 = vpop.eup %1174 }
 0x61b   :  { %v714_v1 = vsel %vm340_vm4, %v1175_v62, 0.0 }
 0x61c   :  { %715 = vadd.xlane.f32.xlu0 %v714_v1 }
 0x622   :  { %v1177_v2 = vpop.eup %1176 }
 0x623   :  { %v821_v3 = vsel %vm340_vm4, %v1177_v2, 0.0 }
 0x624   :  { %822 = vadd.xlane.f32.xlu0 %v821_v3 }
 0x63a   :  { %828 = vrot.lane.b32.xlu0 %v1512_v63, %s1333_s3 }
 0x6a9   :  { %v716_v4 = vpop.xlane.xlu0 %715 }
 0x6aa   :  { %1178 = vrcp.f32 %v716_v4 }
 0x6b1   :  { %v823_v5 = vpop.xlane.xlu0 %822 }
 0x6b2   :  { %1180 = vrcp.f32 %v823_v5 }
 0x6b4   :  { %v1179_v6 = vpop.eup %1178 }
 0x6b5   :  { %v718_v7 = vmul.f32 %v1179_v6, %v1175_v62  ;;  %v829_v9 = vpop.permute.xlu0 %828 }
 0x6b7   :  { %v719_v8 = vpack.c.bf16 %v718_v7, %v718_v7 }
 0x6b9   :  { %1116 = vmatmul.mubr.msk.bf16.vlgmr.msra.gmra.mrb[20].mxu0 %vm340_vm4, %v719_v8 }
 0x6ba   :  { %1126 = vmatpush3.bf16.msra.mxu0 %v829_v9  ;;  %1127 = vmatprep.mubr.msk.bf16.mxu0 %vm1332_vm0, %v1331_v0 }
 0x6bb   :  { %1137 = vmatprep.subr.bf16.mxu0 %v1331_v0 }
 0x6bc   :  { %v1181_v10 = vpop.eup %1180 }
 0x6bd   :  { %v825_v11 = vmul.f32 %v1181_v10, %v1177_v2 }
 0x6bf   :  { %v826_v12 = vpack.c.bf16 %v825_v11, %v825_v11 }
 0x6c1   :  { %1128 = vmatmul.mubr.msk.bf16.vlgmr.msra.gmra.mrb[24].mxu0 %vm340_vm4, %v826_v12 }
 0x6c2   :  { %1138 = vmatpush3.bf16.msra.mxu0 %v1533_v19  ;;  %1139 = vmatprep.mubr.msk.bf16.mxu0 %vm1332_vm0, %v1331_v0 }
 0x78c   :  { %v757_v63 = vpop.f32.mrb[20].mxu0 }
 0x78d   :  { %v763_v13 = vpack.c.bf16 %v757_v63, %v757_v63  ;;  %v1117_v14 = vpop.f32.mrb[21].mxu0 }
 0x78e   :  { %v760_v15 = vpop.f32.mrb[22].mxu0 }
 0x78f   :  { %v1118_v16 = vpop.f32.mrb[23].mxu0  ;;  %1140 = vmatmul.mubr.msk.bf16.vlgmr.msra.gmra.mrb[28].mxu0 %vm340_vm4, %v763_v13 }
 0x794   :  { %v868_v17 = vpop.f32.mrb[24].mxu0 }
 0x795   :  { %v874_v18 = vpack.c.bf16 %v868_v17, %v868_v17  ;;  %v1129_v20 = vpop.f32.mrb[25].mxu0 }
 0x796   :  { %v871_v21 = vpop.f32.mrb[26].mxu0 }
 0x797   :  { %v1130_v22 = vpop.f32.mrb[27].mxu0  ;;  %1134 = vmatmul.mubr.msk.bf16.vlgmr.msra.gmra.mrb[24].mxu1 %vm340_vm4, %v874_v18 }
 0x862   :  { %v955_v23 = vpop.f32.mrb[28].mxu0 }
 0x863   :  { %v1141_v24 = vpop.f32.mrb[29].mxu0 }
 0x864   :  { %v958_v19 = vpop.f32.mrb[30].mxu0 }
 0x865   :  { %v1142_v25 = vpop.f32.mrb[31].mxu0 }
 0x86a   :  { %v912_v26 = vpop.f32.mrb[24].mxu1 }
 0x86b   :  { %v956_v0 = vadd.f32 %v955_v23, %v912_v26  ;;  %v1135_v27 = vpop.f32.mrb[25].mxu1 }
 0x86c   :  { %v915_v28 = vpop.f32.mrb[26].mxu1 }
 0x86d   :  { %v961_v30 = vadd.f32 %v1562_v39, %v956_v0  ;;  %v1136_v31 = vpop.f32.mrb[27].mxu1 }
 0x86f   :  { %963 = vst [vmem:[#allocation11 + $0x8] sm:$0xff] %v961_v30 }
 0x870   :  { %1303 = shalt.err (!%p1300_p2)
}
 0x871   :  { %s1304_s6 = scalar_lea.hbm %s1607_s10, 256 }
 0x872   :  { %p1305_p3 = scmp.ne.s32.totalorder %s1607_s10, %s1304_s6  ;;  %p1308_p4 = scmp.lt.u32.totalorder %s1304_s6, %s1607_s10 }
 0x874   :  { %p1310_p5 = pnand %p1308_p4, %p1305_p3 }
 0x876   :  { %1313 = shalt.err (!%p1310_p5)
}
 0x877   :  { %975 = dma.vmem_to_hbm [thread:$0]  %s970_s29, 256, %s1607_s10, [#allocation4], %s1323_s23, %s1323_s23, %s1324_s24  }
 0x878   :  { %1320 = dma.done.wait [#allocation4], 256  }
 0x879   :  { %1321 = vsyncadd [#allocation4], 4294967040 }
 0x87a   :  { %979 = vsyncpa [#allocation3], 1 }
 0x87b   :  { %980 = vsyncpa [#allocation6], 1 }
 0x87c   :  { %981 = vsyncpa [#allocation9], 1 }
 0x87d   :  { %982 = vsyncpa [#allocation4], 1 }

</bundles_post_ra>
